<compile_context>
chip_gen: v7x
topology: tpu7x:2x2x1
jax: 0.10.0
libtpu: 0.0.40
codegen_flags: <defaults>
</compile_context>

<pallas_src>
import jax
import jax.numpy as jnp
from jax.experimental import pallas as pl
from jax.experimental.pallas import tpu as pltpu


def _round_up(x, m):
    return ((x + m - 1) // m) * m


def _mae_partial_kernel(pred_ref, act_ref, out_ref):
    # De-normalization is algebraically redundant: mean cancels, std factors
    # out (applied to the final scalar in the wrapper). Only vsub + vabs here.
    p = pred_ref[...].astype(jnp.float32)
    a = act_ref[...].astype(jnp.float32)
    abs_diff = jnp.abs(p - a)                                  # [tile_b, T_pad] (VPU)
    # One cross-sublane reduce per tile; output stays lane-dense (T_pad % 128 == 0).
    out_ref[...] = jnp.sum(abs_diff, axis=0, keepdims=True)    # [1, T_pad]


def _mae_loss_pallas(predictions, actuals, mean, std, *, max_tile_b=1024):
    B, T = predictions.shape
    itemsize = jnp.dtype(predictions.dtype).itemsize

    # Lane-dense sequence dim.
    T_pad = _round_up(T, 128)

    # Pick the batch tile: 2 inputs x 2 pipeline buffers (+ f32 temporaries),
    # keep it well inside the smallest default scoped VMEM limit (v5e: 16 MiB).
    vmem_budget = 8 * 1024 * 1024
    per_row_bytes = (4 * itemsize + 8) * T_pad        # 4 buffered input rows + f32 temp slack
    tile_b = max(8, min(max_tile_b, vmem_budget // per_row_bytes))
    tile_b = max(8, (tile_b // 8) * 8)
    tile_b = min(tile_b, _round_up(B, 8))             # don't over-pad tiny batches
    tile_b = max(8, (tile_b // 8) * 8)

    B_pad = _round_up(B, tile_b)
    num_tiles = B_pad // tile_b

    def pad2d(x):
        if x.shape == (B_pad, T_pad):
            return x
        return jnp.pad(x, ((0, B_pad - B), (0, T_pad - T)))    # zero pads -> |diff| = 0

    pred_p = pad2d(predictions)
    act_p = pad2d(actuals)

    # Only raise the scoped-VMEM limit if the minimum tile already exceeds the
    # conservative budget (e.g. extremely long sequences).
    est_bytes = 4 * tile_b * T_pad * itemsize + tile_b * T_pad * 4 + 2 * T_pad * 4
    if est_bytes > 12 * 1024 * 1024:
        compiler_params = pltpu.CompilerParams(
            dimension_semantics=("parallel",),
            vmem_limit_bytes=int(est_bytes * 3 // 2),
        )
    else:
        compiler_params = pltpu.CompilerParams(dimension_semantics=("parallel",))

    partials = pl.pallas_call(
        _mae_partial_kernel,
        out_shape=jax.ShapeDtypeStruct((num_tiles, T_pad), jnp.float32),
        grid=(num_tiles,),
        in_specs=[
            pl.BlockSpec((tile_b, T_pad), lambda i: (i, 0)),
            pl.BlockSpec((tile_b, T_pad), lambda i: (i, 0)),
        ],
        out_specs=pl.BlockSpec((1, T_pad), lambda i: (i, 0)),
        compiler_params=compiler_params,
    )(pred_p, act_p)

    # Final tiny reduction + the folded |std| / (T * B) scale, in plain JAX.
    scale = abs(float(std)) / (float(T) * float(B))
    return jnp.sum(partials) * jnp.float32(scale)


def mae_loss_ref(predictions, actuals, mean, std):
    """Pure-JAX reference matching the PyTorch module exactly."""
    T = predictions.shape[1]
    p = predictions.astype(jnp.float32) * std + mean
    a = actuals.astype(jnp.float32) * std + mean
    sumf = jnp.sum(jnp.abs(p - a), axis=1)
    return jnp.mean(sumf / T)


def mae_loss(predictions, actuals, mean, std, *, use_pallas=None, max_tile_b=1024):
    """MAELoss.forward.

    predictions, actuals: [batch, seq] arrays (any float dtype; narrow dtypes
    like bf16 are kept narrow in HBM and cast to f32 inside the kernel).
    mean, std: python floats (de-normalization constants; mean cancels exactly).
    use_pallas: None -> auto-dispatch (tiny problems go to the fused XLA path,
    where pallas_call launch overhead would dominate); True/False forces.
    """
    assert predictions.shape == actuals.shape
    B, T = predictions.shape
    if use_pallas is None:
        use_pallas = (B * T) >= 16384
    if not use_pallas:
        return mae_loss_ref(predictions, actuals, mean, std)
    return _mae_loss_pallas(predictions, actuals, mean, std, max_tile_b=max_tile_b)


if __name__ == "__main__":
    # Deterministic "module parameters" (MAELoss.__init__ takes scalar mean/std).
    MEAN = 3.5
    STD = 2.0

    key = jax.random.PRNGKey(0)

    # --- Test 1: small shape consistent with the module forward: [batch, seq]
    B, T = 4, 8
    kp, ka, key = jax.random.split(key, 3)
    predictions = jax.random.normal(kp, (B, T), dtype=jnp.float32)
    actuals = jax.random.normal(ka, (B, T), dtype=jnp.float32)

    loss = mae_loss(predictions, actuals, MEAN, STD, use_pallas=True)
    loss = jax.block_until_ready(loss)
    ref = mae_loss_ref(predictions, actuals, MEAN, STD)
    assert jnp.allclose(loss, ref, rtol=1e-4, atol=1e-5), (loss, ref)

    # --- Test 2: bf16 inputs, non-aligned seq, multiple batch tiles (grid > 1).
    B2, T2 = 64, 300
    kp2, ka2 = jax.random.split(key)
    pred2 = jax.random.normal(kp2, (B2, T2), dtype=jnp.float32).astype(jnp.bfloat16)
    act2 = jax.random.normal(ka2, (B2, T2), dtype=jnp.float32).astype(jnp.bfloat16)

    loss2 = mae_loss(pred2, act2, MEAN, STD, use_pallas=True, max_tile_b=16)
    loss2 = jax.block_until_ready(loss2)
    ref2 = mae_loss_ref(pred2, act2, MEAN, STD)
    assert jnp.allclose(loss2, ref2, rtol=1e-3, atol=1e-4), (loss2, ref2)

    print("KERNEL_OK")
</pallas_src>

<mosaic_0001>
module attributes {stable_mosaic.version = 11 : i64} {
  func.func @_mae_partial_kernel(%arg0: i32, %arg1: memref<8x128xf32, #tpu.memory_space<vmem>>, %arg2: memref<8x128xf32, #tpu.memory_space<vmem>>, %arg3: memref<1x128xf32, #tpu.memory_space<vmem>>) attributes {dimension_semantics = [#tpu.dimension_semantics<parallel>], iteration_bounds = array<i64: 1>, scalar_prefetch = 0 : i64, scratch_operands = 0 : i64, tpu.core_type = #tpu.core_type<tc>, window_params = [{transform_indices = @transform_0, window_bounds = array<i64: 8, 128>}, {transform_indices = @transform_1, window_bounds = array<i64: 8, 128>}, {transform_indices = @transform_2, window_bounds = array<i64: 1, 128>}]} {
    %c0 = arith.constant 0 : index
    %c0_0 = arith.constant 0 : index
    %0 = vector.load %arg1[%c0, %c0_0] : memref<8x128xf32, #tpu.memory_space<vmem>>, vector<8x128xf32>
    %c0_1 = arith.constant 0 : index
    %c0_2 = arith.constant 0 : index
    %1 = vector.load %arg2[%c0_1, %c0_2] : memref<8x128xf32, #tpu.memory_space<vmem>>, vector<8x128xf32>
    %2 = arith.subf %0, %1 : vector<8x128xf32>
    %3 = math.absf %2 : vector<8x128xf32>
    %cst = arith.constant dense<0.000000e+00> : vector<128xf32>
    %4 = vector.multi_reduction <add>, %3, %cst [0] : vector<8x128xf32> to vector<128xf32>
    %5 = vector.shape_cast %4 : vector<128xf32> to vector<1x128xf32>
    %c0_3 = arith.constant 0 : index
    %c0_4 = arith.constant 0 : index
    %6 = vector.load %arg3[%c0_3, %c0_4] : memref<1x128xf32, #tpu.memory_space<vmem>>, vector<1x128xf32>
    tpu.vector_store %arg3[%c0_3, %c0_4], %5 {strides = array<i32>} : memref<1x128xf32, #tpu.memory_space<vmem>>, vector<1x128xf32>,
    return
  }
  func.func @transform_0(%arg0: i32) -> (i32, i32) {
    %c0_i32 = arith.constant 0 : i32
    %c0_i32_0 = arith.constant 0 : i32
    return %arg0, %c0_i32 : i32, i32
  }
  func.func @transform_1(%arg0: i32) -> (i32, i32) {
    %c0_i32 = arith.constant 0 : i32
    %c0_i32_0 = arith.constant 0 : i32
    return %arg0, %c0_i32 : i32, i32
  }
  func.func @transform_2(%arg0: i32) -> (i32, i32) {
    %c0_i32 = arith.constant 0 : i32
    %c0_i32_0 = arith.constant 0 : i32
    return %arg0, %c0_i32 : i32, i32
  }
}

</mosaic_0001>

<bundles_post_ra>
// kernel: tpu_custom_call.1
= control target key start
LH: loop header
LB: loop body
LE: loop exit
PB: predicated region body
PF: predicated region fallthrough
CT: control target
= control target key end

     0   :  { %7 = vsyncpa [#allocation3], 0  ;;  %s192_s0 = inlined_call_operand.hbm [shape: f32[8,128], index: 0, kind: input, shape index: {}]   ;;  %s193_s1 = inlined_call_operand.hbm [shape: f32[8,128], index: 1, kind: input, shape index: {}]   ;;  %s194_s2 = inlined_call_operand.hbm [shape: f32[1,128], index: 2, kind: output, shape index: {}]  }
   0x1   :  { %8 = vsyncpa [#allocation6], 0 }
   0x2   :  { %9 = vsyncpa [#allocation4], 0  ;;  %s138_s9 = smov [#allocation2]   ;;  %s139_s11 = smov [#allocation5]  }
   0x3   :  { %s16_s10 = sshll.u32 %s138_s9, 4  ;;  %s26_s12 = sshll.u32 %s139_s11, 4  ;;  %s17_s10 = int_to_ptr.vmem [resolvable:$true] %s16_s10  ;;  %s27_s12 = int_to_ptr.vmem [resolvable:$true] %s26_s12 }
   0x4   :  { %s66_s15 = scalar_lea.hbm %s192_s0, 128 }
   0x5   :  { %p67_p0 = scmp.ne.s32.totalorder %s192_s0, %s66_s15  ;;  %p70_p1 = scmp.lt.u32.totalorder %s66_s15, %s192_s0 }
   0x7   :  { %p72_p2 = pnand %p70_p1, %p67_p0 }
   0x9   :  { %75 = shalt.err (!%p72_p2)
}
   0xa   :  { %s76_s20 = scalar_lea.vmem %s17_s10, 128  ;;  %p81_p4 = scmp.lt.s32.totalorder %s17_s10, %s17_s10 }
   0xb   :  { %p77_p3 = scmp.ne.s32.totalorder %s17_s10, %s76_s20  ;;  %p82_p5 = scmp.lt.s32.totalorder %s76_s20, %s76_s20 }
   0xd   :  { %p83_p6 = por %p82_p5, %p81_p4 }
   0xf   :  { %p84_p7 = pnand %p83_p6, %p77_p3 }
  0x11   :  { %87 = shalt.err (!%p84_p7)
}
  0x12   :  { %19 = dma.hbm_to_vmem [thread:$0]  %s192_s0, 128, %s17_s10, [#allocation3]  }
  0x13   :  { %s88_s25 = scalar_lea.hbm %s193_s1, 128 }
  0x14   :  { %p89_p8 = scmp.ne.s32.totalorder %s193_s1, %s88_s25  ;;  %p92_p9 = scmp.lt.u32.totalorder %s88_s25, %s193_s1 }
  0x16   :  { %p94_p10 = pnand %p92_p9, %p89_p8 }
  0x18   :  { %97 = shalt.err (!%p94_p10)
}
  0x19   :  { %s98_s30 = scalar_lea.vmem %s27_s12, 128  ;;  %p103_p12 = scmp.lt.s32.totalorder %s27_s12, %s27_s12 }
  0x1a   :  { %p99_p11 = scmp.ne.s32.totalorder %s27_s12, %s98_s30  ;;  %p104_p13 = scmp.lt.s32.totalorder %s98_s30, %s98_s30 }
  0x1c   :  { %p105_p0 = por %p104_p13, %p103_p12 }
  0x1e   :  { %p106_p1 = pnand %p105_p0, %p99_p11 }
  0x20   :  { %109 = shalt.err (!%p106_p1)
}
  0x21   :  { %29 = dma.hbm_to_vmem [thread:$0]  %s193_s1, 128, %s27_s12, [#allocation6]  }
  0x22   :  { %132 = dma.done.wait [#allocation3], 128  }
  0x23   :  { %133 = vsyncadd [#allocation3], 4294967168 }
  0x24   :  { %134 = dma.done.wait [#allocation6], 128  }
  0x25   :  { %135 = vsyncadd [#allocation6], 4294967168  ;;  %v36_v0 = vld [vmem:[#allocation2] sm:$0xff]  ;;  %v37_v1 = vld [vmem:[#allocation5] sm:$0xff]  ;;  %s140_s4 = smov [#allocation7]  }
  0x26   :  { %v38_v2 = vsub.f32 %v36_v0, %v37_v1  ;;  %s53_s5 = sshll.u32 %s140_s4, 4  ;;  %s54_s5 = int_to_ptr.vmem [resolvable:$true] %s53_s5 }
  0x27   :  { %s110_s6 = scalar_lea.vmem %s54_s5, 16  ;;  %s114_s1 = scalar_lea.vmem %s54_s5, 32 }
  0x28   :  { %v39_v3 = vand.u32 2147483647, %v38_v2  ;;  %p111_p2 = scmp.ne.s32.totalorder %s54_s5, %s110_s6  ;;  %p115_p3 = scmp.lt.s32.totalorder %s54_s5, %s54_s5 }
  0x29   :  { %p116_p4 = scmp.lt.s32.totalorder %s114_s1, %s110_s6 }
  0x2a   :  { %v40_v4 = vrot.slane %v39_v3, 4 }
  0x2b   :  { %p117_p5 = por %p116_p4, %p115_p3 }
  0x2c   :  { %v41_v5 = vadd.f32 %v40_v4, %v39_v3 }
  0x2d   :  { %p118_p6 = pnand %p117_p5, %p111_p2 }
  0x2e   :  { %v42_v6 = vrot.slane %v41_v5, 2 }
  0x30   :  { %v43_v7 = vadd.f32 %v42_v6, %v41_v5 }
  0x32   :  { %v44_v8 = vrot.slane %v43_v7, 1 }
  0x34   :  { %v45_v9 = vadd.f32 %v44_v8, %v43_v7 }
  0x36   :  { %46 = vst [vmem:[#allocation7] sm:$0x1] %v45_v9 }
  0x37   :  { %121 = shalt.err (!%p118_p6)
}
  0x38   :  { %s122_s9 = scalar_lea.hbm %s194_s2, 16 }
  0x39   :  { %p123_p7 = scmp.ne.s32.totalorder %s194_s2, %s122_s9  ;;  %p126_p8 = scmp.lt.u32.totalorder %s122_s9, %s194_s2 }
  0x3b   :  { %p128_p9 = pnand %p126_p8, %p123_p7 }
  0x3d   :  { %131 = shalt.err (!%p128_p9)
}
  0x3e   :  { %56 = dma.vmem_to_hbm [thread:$0]  %s54_s5, 16, %s194_s2, [#allocation4]  }
  0x3f   :  { %136 = dma.done.wait [#allocation4], 16  }
  0x40   :  { %137 = vsyncadd [#allocation4], 4294967280 }
  0x41   :  { %60 = vsyncpa [#allocation3], 1 }
  0x42   :  { %61 = vsyncpa [#allocation6], 1 }
  0x43   :  { %62 = vsyncpa [#allocation4], 1 }

</bundles_post_ra>
